<compile_context>
chip_gen: v7x
topology: tpu7x:2x2x1
jax: 0.10.0
libtpu: 0.0.40
codegen_flags: <defaults>
</compile_context>

<pallas_src>
from functools import partial

import jax
import jax.numpy as jnp
from jax.experimental import pallas as pl
from jax.experimental.pallas import tpu as pltpu


# -----------------------------------------------------------------------------
# Helpers
# -----------------------------------------------------------------------------
def _ceil_to(x, m):
    return max(m, -(-x // m) * m)


def _mm_compiler_params():
    return pltpu.CompilerParams(
        dimension_semantics=("parallel", "parallel", "arbitrary"),
        vmem_limit_bytes=32 * 1024 * 1024,
    )


def _pick_tiles(M, Kp, Np):
    """Tile sizes: lane-dense N (128/256), K tiles dividing padded K, M <= 256."""
    tn = 256 if Np % 256 == 0 else 128
    tk = next(t for t in (512, 256, 128) if Kp % t == 0)
    if M <= 256:
        tm = _ceil_to(M, 16)          # bf16 sublane packing -> multiple of 16
        Mp = tm
    else:
        tm = 256
        Mp = _ceil_to(M, 256)
    return tm, tn, tk, Mp


# -----------------------------------------------------------------------------
# Pallas kernels
# -----------------------------------------------------------------------------
def _conv_mm_kernel(*refs, act, has_res):
    """Tiled (patches @ weight) with K accumulation; bias/act/residual epilogue."""
    if has_res:
        a_ref, b_ref, bias_ref, res_ref, o_ref, acc_ref = refs
    else:
        a_ref, b_ref, bias_ref, o_ref, acc_ref = refs

    k = pl.program_id(2)

    @pl.when(k == 0)
    def _init():
        acc_ref[...] = jnp.zeros_like(acc_ref)

    acc_ref[...] += jnp.dot(a_ref[...], b_ref[...],
                            preferred_element_type=jnp.float32)

    @pl.when(k == pl.num_programs(2) - 1)
    def _finish():
        y = acc_ref[...] + bias_ref[...]
        if has_res:
            y = y + res_ref[...]
        if act == "relu":
            y = jnp.maximum(y, 0.0)
        elif act == "sigmoid":
            y = jax.nn.sigmoid(y)
        o_ref[...] = y.astype(o_ref.dtype)


def _vae_heads_kernel(a_ref, bm_ref, bl_ref, biasm_ref, biasl_ref, z_ref,
                      mean_ref, logvar_ref, lat_ref, accm_ref, accl_ref):
    """Fused mean/logvar convs (shared patches) + reparameterization epilogue."""
    k = pl.program_id(2)

    @pl.when(k == 0)
    def _init():
        accm_ref[...] = jnp.zeros_like(accm_ref)
        accl_ref[...] = jnp.zeros_like(accl_ref)

    a = a_ref[...]
    accm_ref[...] += jnp.dot(a, bm_ref[...], preferred_element_type=jnp.float32)
    accl_ref[...] += jnp.dot(a, bl_ref[...], preferred_element_type=jnp.float32)

    @pl.when(k == pl.num_programs(2) - 1)
    def _finish():
        m = accm_ref[...] + biasm_ref[...]
        lv = accl_ref[...] + biasl_ref[...]
        mean_ref[...] = m
        logvar_ref[...] = lv
        lat_ref[...] = m + jnp.exp(0.5 * lv) * z_ref[...]


def _occ_mul_kernel(x_ref, occ_ref, o_ref):
    """latent * occlusion with the (rows, 1) occlusion broadcast in-kernel."""
    o_ref[...] = x_ref[...] * occ_ref[...]


# -----------------------------------------------------------------------------
# Pallas wrappers
# -----------------------------------------------------------------------------
def matmul_bias_act(patches, w_pad, bias_pad, out_features, act="none",
                    residual=None):
    """patches (M,K) f32  x  pre-padded bf16 weight (Kp,Np)  -> (M, out_features)."""
    M, K = patches.shape
    Kp, Np = w_pad.shape
    tm, tn, tk, Mp = _pick_tiles(M, Kp, Np)

    a = jnp.pad(patches, ((0, Mp - M), (0, Kp - K))).astype(jnp.bfloat16)

    in_arrays = [a, w_pad, bias_pad]
    in_specs = [
        pl.BlockSpec((tm, tk), lambda i, j, k: (i, k)),
        pl.BlockSpec((tk, tn), lambda i, j, k: (k, j)),
        pl.BlockSpec((1, tn), lambda i, j, k: (0, j)),
    ]
    has_res = residual is not None
    if has_res:
        r = jnp.pad(residual,
                    ((0, Mp - M), (0, Np - residual.shape[1]))).astype(jnp.float32)
        in_arrays.append(r)
        in_specs.append(pl.BlockSpec((tm, tn), lambda i, j, k: (i, j)))

    out = pl.pallas_call(
        partial(_conv_mm_kernel, act=act, has_res=has_res),
        out_shape=jax.ShapeDtypeStruct((Mp, Np), jnp.float32),
        grid=(Mp // tm, Np // tn, Kp // tk),
        in_specs=in_specs,
        out_specs=pl.BlockSpec((tm, tn), lambda i, j, k: (i, j)),
        scratch_shapes=[pltpu.VMEM((tm, tn), jnp.float32)],
        compiler_params=_mm_compiler_params(),
    )(*in_arrays)
    return out[:M, :out_features]


def vae_heads_pallas(patches, mean_p, logvar_p, z2d):
    """Fused mean/logvar heads + reparameterization over shared im2col patches."""
    M, K = patches.shape
    Kp, Np = mean_p["w"].shape
    cout = mean_p["cout"]
    tm, tn, tk, Mp = _pick_tiles(M, Kp, Np)

    a = jnp.pad(patches, ((0, Mp - M), (0, Kp - K))).astype(jnp.bfloat16)
    z_pad = jnp.pad(z2d, ((0, Mp - M), (0, Np - z2d.shape[1]))).astype(jnp.float32)

    out_block = lambda: pl.BlockSpec((tm, tn), lambda i, j, k: (i, j))
    mean2d, logvar2d, lat2d = pl.pallas_call(
        _vae_heads_kernel,
        out_shape=(jax.ShapeDtypeStruct((Mp, Np), jnp.float32),
                   jax.ShapeDtypeStruct((Mp, Np), jnp.float32),
                   jax.ShapeDtypeStruct((Mp, Np), jnp.float32)),
        grid=(Mp // tm, Np // tn, Kp // tk),
        in_specs=[
            pl.BlockSpec((tm, tk), lambda i, j, k: (i, k)),
            pl.BlockSpec((tk, tn), lambda i, j, k: (k, j)),
            pl.BlockSpec((tk, tn), lambda i, j, k: (k, j)),
            pl.BlockSpec((1, tn), lambda i, j, k: (0, j)),
            pl.BlockSpec((1, tn), lambda i, j, k: (0, j)),
            pl.BlockSpec((tm, tn), lambda i, j, k: (i, j)),
        ],
        out_specs=(out_block(), out_block(), out_block()),
        scratch_shapes=[pltpu.VMEM((tm, tn), jnp.float32),
                        pltpu.VMEM((tm, tn), jnp.float32)],
        compiler_params=_mm_compiler_params(),
    )(a, mean_p["w"], logvar_p["w"], mean_p["b"], logvar_p["b"], z_pad)
    return mean2d[:M, :cout], logvar2d[:M, :cout], lat2d[:M, :cout]


def occlusion_mul_pallas(latent_nhwc, occ_nhw1):
    """NHWC latent * (N,H,W,1) occlusion; broadcast done in VMEM."""
    N, H, W, C = latent_nhwc.shape
    M = N * H * W
    x2 = latent_nhwc.reshape(M, C)
    o2 = occ_nhw1.reshape(M, 1)

    if M <= 4096:
        tm = _ceil_to(M, 8)
        Mp = tm
    else:
        tm = 4096
        Mp = _ceil_to(M, 4096)
    x2 = jnp.pad(x2, ((0, Mp - M), (0, 0)))
    o2 = jnp.pad(o2, ((0, Mp - M), (0, 0)))

    out = pl.pallas_call(
        _occ_mul_kernel,
        out_shape=jax.ShapeDtypeStruct((Mp, C), jnp.float32),
        grid=(Mp // tm,),
        in_specs=[pl.BlockSpec((tm, C), lambda i: (i, 0)),
                  pl.BlockSpec((tm, 1), lambda i: (i, 0))],
        out_specs=pl.BlockSpec((tm, C), lambda i: (i, 0)),
        compiler_params=pltpu.CompilerParams(dimension_semantics=("parallel",)),
    )(x2, o2)
    return out[:M].reshape(N, H, W, C)


# -----------------------------------------------------------------------------
# Conv plumbing (NHWC im2col, no transposes)
# -----------------------------------------------------------------------------
def _im2col_3x3(x, stride=1):
    """NHWC 3x3 im2col with padding=1. Column order = (kh, kw, cin)."""
    N, H, W, Cin = x.shape
    xp = jnp.pad(x, ((0, 0), (1, 1), (1, 1), (0, 0)))
    H_out = (H + 2 - 3) // stride + 1
    W_out = (W + 2 - 3) // stride + 1
    slices = [
        xp[:, kh:kh + stride * (H_out - 1) + 1:stride,
           kw:kw + stride * (W_out - 1) + 1:stride, :]
        for kh in range(3) for kw in range(3)
    ]
    patches = jnp.stack(slices, axis=3).reshape(N * H_out * W_out, 9 * Cin)
    return patches, (N, H_out, W_out)


def conv3x3_nhwc(x, p, stride=1, act="none", residual=None):
    """PyTorch-semantics Conv2d(3x3, padding=1) on NHWC activations."""
    patches, (N, Ho, Wo) = _im2col_3x3(x, stride)
    res2d = None
    if residual is not None:
        res2d = residual.reshape(N * Ho * Wo, p["cout"])
    y = matmul_bias_act(patches, p["w"], p["b"], p["cout"], act=act, residual=res2d)
    return y.reshape(N, Ho, Wo, p["cout"])


# -----------------------------------------------------------------------------
# Plain-JAX glue (gather-heavy ops: resize + grid_sample)
# -----------------------------------------------------------------------------
def interpolate_bilinear_nhwc(x, out_h, out_w):
    """F.interpolate(mode='bilinear', align_corners=False) on NHWC."""
    # TODO(synk): gather-based resize kept in plain JAX (no rectangular BlockSpec).
    N, H, W, C = x.shape
    ys = (jnp.arange(out_h, dtype=jnp.float32) + 0.5) * (H / out_h) - 0.5
    xs = (jnp.arange(out_w, dtype=jnp.float32) + 0.5) * (W / out_w) - 0.5
    ys = jnp.clip(ys, 0.0, H - 1.0)
    xs = jnp.clip(xs, 0.0, W - 1.0)
    y0 = jnp.floor(ys).astype(jnp.int32)
    x0 = jnp.floor(xs).astype(jnp.int32)
    y1 = jnp.minimum(y0 + 1, H - 1)
    x1 = jnp.minimum(x0 + 1, W - 1)
    wy1 = ys - y0.astype(jnp.float32)
    wy0 = 1.0 - wy1
    wx1 = xs - x0.astype(jnp.float32)
    wx0 = 1.0 - wx1

    def g(yi, xi):
        return x[:, yi[:, None], xi[None, :], :]          # (N, out_h, out_w, C)

    def w(a, b):
        return (a[:, None] * b[None, :])[None, :, :, None]

    return (g(y0, x0) * w(wy0, wx0) + g(y0, x1) * w(wy0, wx1)
            + g(y1, x0) * w(wy1, wx0) + g(y1, x1) * w(wy1, wx1))


def grid_sample_bilinear_nhwc(x, grid):
    """F.grid_sample(bilinear, padding='zeros', align_corners=True) on NHWC."""
    # TODO(synk): data-dependent gather kept in plain JAX.
    N, H, W, C = x.shape
    gx = grid[..., 0]
    gy = grid[..., 1]
    ix = (gx + 1.0) * 0.5 * (W - 1)
    iy = (gy + 1.0) * 0.5 * (H - 1)
    ix0 = jnp.floor(ix)
    iy0 = jnp.floor(iy)
    ix1 = ix0 + 1.0
    iy1 = iy0 + 1.0
    wx1 = ix - ix0
    wx0 = 1.0 - wx1
    wy1 = iy - iy0
    wy0 = 1.0 - wy1

    def corner(iy_f, ix_f, wgt):
        valid = ((ix_f >= 0) & (ix_f <= W - 1) &
                 (iy_f >= 0) & (iy_f <= H - 1)).astype(x.dtype)
        ixc = jnp.clip(ix_f, 0, W - 1).astype(jnp.int32)
        iyc = jnp.clip(iy_f, 0, H - 1).astype(jnp.int32)

        def per_batch(xb, iyb, ixb):
            return xb[iyb, ixb, :]                        # (Hg, Wg, C)

        vals = jax.vmap(per_batch)(x, iyc, ixc)           # (N, Hg, Wg, C)
        return vals * (wgt * valid)[..., None]

    return (corner(iy0, ix0, wy0 * wx0) + corner(iy0, ix1, wy0 * wx1)
            + corner(iy1, ix0, wy1 * wx0) + corner(iy1, ix1, wy1 * wx1))


# -----------------------------------------------------------------------------
# Parameters (pre-padded / pre-reshaped once) + forward
# -----------------------------------------------------------------------------
def _prep_conv(key, cin, cout, k=3):
    k1, k2 = jax.random.split(key)
    w = jax.random.normal(k1, (cout, cin, k, k), jnp.float32) * 0.05
    b = jax.random.normal(k2, (cout,), jnp.float32) * 0.05
    K = cin * k * k
    Kp, Np = _ceil_to(K, 128), _ceil_to(cout, 128)
    # (cout, cin, kh, kw) -> (kh, kw, cin, cout) -> (K, cout): matches patch cols.
    w_mat = jnp.transpose(w, (2, 3, 1, 0)).reshape(K, cout)
    w_pad = jnp.zeros((Kp, Np), jnp.bfloat16).at[:K, :cout].set(
        w_mat.astype(jnp.bfloat16))
    b_pad = jnp.zeros((1, Np), jnp.float32).at[0, :cout].set(b)
    return {"w": w_pad, "b": b_pad, "cin": cin, "cout": cout}


def init_params(key, num_channels, layer_xp, num_layers, num_reslayers, max_channel):
    ch = lambda i: min(max_channel, (2 ** i) * layer_xp)
    keys = iter(jax.random.split(key, 64))

    encoder = []
    cin = num_channels
    for i in range(num_layers):
        cout = ch(i + 1)
        encoder.append(_prep_conv(next(keys), cin, cout))
        cin = cout
    latent_ch = ch(num_layers)

    mean_p = _prep_conv(next(keys), latent_ch, latent_ch)
    logvar_p = _prep_conv(next(keys), latent_ch, latent_ch)

    dec_res = []
    for _ in range(num_reslayers):
        p1 = _prep_conv(next(keys), latent_ch, latent_ch)
        p2 = _prep_conv(next(keys), latent_ch, latent_ch)
        dec_res.append((p1, p2))

    dec_up = []
    cin = latent_ch
    for i in range(num_layers - 1, -1, -1):
        cout = ch(i)
        dec_up.append(_prep_conv(next(keys), cin, cout))
        cin = cout
    dec_out = _prep_conv(next(keys), cin, num_channels)

    return dict(encoder=encoder, mean=mean_p, logvar=logvar_p,
                dec_res=dec_res, dec_up=dec_up, dec_out=dec_out)


def generator_vae_forward(params, frame_source, motion, z_key, scalestep=2):
    out = {}

    # NCHW -> NHWC once; everything internal is NHWC (lane-dense channels).
    x = jnp.transpose(frame_source, (0, 2, 3, 1))

    # ---- Encoder_gen: conv(3x3, stride=scalestep) + ReLU stack ----
    for p in params["encoder"]:
        x = conv3x3_nhwc(x, p, stride=scalestep, act="relu")
    latent = x
    N, Hl, Wl, Cl = latent.shape

    # ---- fused mean / logvar heads + reparameterization ----
    patches, _ = _im2col_3x3(latent, stride=1)
    z = jax.random.normal(z_key, (N * Hl * Wl, Cl), jnp.float32)
    mean2d, logvar2d, lat2d = vae_heads_pallas(
        patches, params["mean"], params["logvar"], z)
    mean = mean2d.reshape(N, Hl, Wl, Cl)
    logvar = logvar2d.reshape(N, Hl, Wl, Cl)
    latent = lat2d.reshape(N, Hl, Wl, Cl)
    out["mean"] = jnp.transpose(mean, (0, 3, 1, 2))
    out["logvar"] = jnp.transpose(logvar, (0, 3, 1, 2))

    # ---- motion warping ----
    flow = motion["motion"]                               # (N, Hm, Wm, 2)
    flow_r = interpolate_bilinear_nhwc(flow, Hl, Wl)      # resize to latent size
    latent = grid_sample_bilinear_nhwc(latent, flow_r)

    if "occlusion" in motion:
        occ = jnp.transpose(motion["occlusion"], (0, 2, 3, 1))   # (N,Hm,Wm,1)
        occ = interpolate_bilinear_nhwc(occ, Hl, Wl)
        latent = occlusion_mul_pallas(latent, occ)

    # ---- Decoder_gen: res blocks (residual+ReLU fused) then upsample+conv ----
    x = latent
    for p1, p2 in params["dec_res"]:
        h = conv3x3_nhwc(x, p1, act="relu")
        x = conv3x3_nhwc(h, p2, act="relu", residual=x)   # relu(conv(h)+b+x)
    for p in params["dec_up"]:
        # TODO(synk): fold nearest-upsample into the conv patch indexing
        # (index_map on h//2, w//2) to avoid materializing the 4x tensor.
        x = jnp.repeat(jnp.repeat(x, scalestep, axis=1), scalestep, axis=2)
        x = conv3x3_nhwc(x, p, act="relu")
    x = conv3x3_nhwc(x, params["dec_out"], act="sigmoid")

    out["frame_generated"] = jnp.transpose(x, (0, 3, 1, 2))   # back to NCHW
    return out


# -----------------------------------------------------------------------------
# Main
# -----------------------------------------------------------------------------
if __name__ == "__main__":
    NUM_CHANNELS = 3
    LAYER_XP = 4
    NUM_LAYERS = 2
    NUM_RESLAYERS = 1
    MAX_CHANNEL = 256
    SCALESTEP = 2

    root = jax.random.PRNGKey(0)
    k_params, k_frame, k_flow, k_occ, k_z = jax.random.split(root, 5)

    params = init_params(k_params, NUM_CHANNELS, LAYER_XP, NUM_LAYERS,
                         NUM_RESLAYERS, MAX_CHANNEL)

    frame_source = jax.random.normal(k_frame, (2, NUM_CHANNELS, 16, 16), jnp.float32)
    motion = {
        "motion": jax.random.uniform(k_flow, (2, 8, 8, 2), jnp.float32, -1.0, 1.0),
        "occlusion": jax.random.uniform(k_occ, (2, 1, 8, 8), jnp.float32, 0.0, 1.0),
    }

    out = generator_vae_forward(params, frame_source, motion, k_z,
                                scalestep=SCALESTEP)
    jax.block_until_ready(out)

    latent_ch = min(MAX_CHANNEL, (2 ** NUM_LAYERS) * LAYER_XP)
    latent_hw = 16 // (SCALESTEP ** NUM_LAYERS)
    assert out["mean"].shape == (2, latent_ch, latent_hw, latent_hw)
    assert out["logvar"].shape == (2, latent_ch, latent_hw, latent_hw)
    assert out["frame_generated"].shape == (2, NUM_CHANNELS, 16, 16)
    assert all(bool(jnp.isfinite(v).all()) for v in out.values())

    print("KERNEL_OK")
</pallas_src>

<mosaic_0001>
module attributes {stable_mosaic.version = 11 : i64} {
  func.func @_conv_mm_kernel(%arg0: i32, %arg1: i32, %arg2: i32, %arg3: memref<128x128xbf16, #tpu.memory_space<vmem>>, %arg4: memref<128x128xbf16, #tpu.memory_space<vmem>>, %arg5: memref<1x128xf32, #tpu.memory_space<vmem>>, %arg6: memref<128x128xf32, #tpu.memory_space<vmem>>, %arg7: memref<128x128xf32, #tpu.memory_space<vmem>>) attributes {dimension_semantics = [#tpu.dimension_semantics<parallel>, #tpu.dimension_semantics<parallel>, #tpu.dimension_semantics<arbitrary>], iteration_bounds = array<i64: 1, 1, 1>, scalar_prefetch = 0 : i64, scratch_operands = 1 : i64, tpu.core_type = #tpu.core_type<tc>, window_params = [{transform_indices = @transform_0, window_bounds = array<i64: 128, 128>}, {transform_indices = @transform_1, window_bounds = array<i64: 128, 128>}, {transform_indices = @transform_2, window_bounds = array<i64: 1, 128>}, {transform_indices = @transform_3, window_bounds = array<i64: 128, 128>}]} {
    %c0_i32 = arith.constant 0 : i32
    %0 = arith.cmpi eq, %arg2, %c0_i32 : i32
    %1 = arith.extui %0 : i1 to i32
    %c0_i32_0 = arith.constant 0 : i32
    %2 = arith.cmpi ne, %1, %c0_i32_0 : i32
    scf.if %2 {
      %cst_10 = arith.constant 0.000000e+00 : f32
      %12 = vector.broadcast %cst_10 : f32 to vector<128x128xf32>
      %c0_11 = arith.constant 0 : index
      %c0_12 = arith.constant 0 : index
      %13 = vector.load %arg7[%c0_11, %c0_12] : memref<128x128xf32, #tpu.memory_space<vmem>>, vector<128x128xf32>
      tpu.vector_store %arg7[%c0_11, %c0_12], %12 {strides = array<i32>} : memref<128x128xf32, #tpu.memory_space<vmem>>, vector<128x128xf32>,
    } else {
    }
    %c0 = arith.constant 0 : index
    %c0_1 = arith.constant 0 : index
    %3 = vector.load %arg7[%c0, %c0_1] : memref<128x128xf32, #tpu.memory_space<vmem>>, vector<128x128xf32>
    %c0_2 = arith.constant 0 : index
    %c0_3 = arith.constant 0 : index
    %4 = vector.load %arg3[%c0_2, %c0_3] : memref<128x128xbf16, #tpu.memory_space<vmem>>, vector<128x128xbf16>
    %c0_4 = arith.constant 0 : index
    %c0_5 = arith.constant 0 : index
    %5 = vector.load %arg4[%c0_4, %c0_5] : memref<128x128xbf16, #tpu.memory_space<vmem>>, vector<128x128xbf16>
    %cst = arith.constant dense<0.000000e+00> : vector<128x128xf32>
    %6 = tpu.matmul %4, %5, %cst {dimension_numbers = #tpu.dot_dimension_numbers<[1], [0], [0], [1], [0, 0, 1, 1], [], []>} : vector<128x128xbf16>, vector<128x128xbf16>, vector<128x128xf32> -> vector<128x128xf32>
    %7 = arith.addf %3, %6 : vector<128x128xf32>
    %c0_6 = arith.constant 0 : index
    %c0_7 = arith.constant 0 : index
    %8 = vector.load %arg7[%c0_6, %c0_7] : memref<128x128xf32, #tpu.memory_space<vmem>>, vector<128x128xf32>
    tpu.vector_store %arg7[%c0_6, %c0_7], %7 {strides = array<i32>} : memref<128x128xf32, #tpu.memory_space<vmem>>, vector<128x128xf32>,
    %c0_i32_8 = arith.constant 0 : i32
    %9 = arith.cmpi eq, %arg2, %c0_i32_8 : i32
    %10 = arith.extui %9 : i1 to i32
    %c0_i32_9 = arith.constant 0 : i32
    %11 = arith.cmpi ne, %10, %c0_i32_9 : i32
    scf.if %11 {
      %c0_10 = arith.constant 0 : index
      %c0_11 = arith.constant 0 : index
      %12 = vector.load %arg7[%c0_10, %c0_11] : memref<128x128xf32, #tpu.memory_space<vmem>>, vector<128x128xf32>
      %c0_12 = arith.constant 0 : index
      %c0_13 = arith.constant 0 : index
      %13 = vector.load %arg5[%c0_12, %c0_13] : memref<1x128xf32, #tpu.memory_space<vmem>>, vector<1x128xf32>
      %14 = vector.broadcast %13 : vector<1x128xf32> to vector<128x128xf32>
      %15 = arith.addf %12, %14 : vector<128x128xf32>
      %cst_14 = arith.constant 0.000000e+00 : f32
      %16 = vector.broadcast %cst_14 : f32 to vector<128x128xf32>
      %17 = arith.maximumf %15, %16 : vector<128x128xf32>
      %c0_15 = arith.constant 0 : index
      %c0_16 = arith.constant 0 : index
      %18 = vector.load %arg6[%c0_15, %c0_16] : memref<128x128xf32, #tpu.memory_space<vmem>>, vector<128x128xf32>
      tpu.vector_store %arg6[%c0_15, %c0_16], %17 {strides = array<i32>} : memref<128x128xf32, #tpu.memory_space<vmem>>, vector<128x128xf32>,
    } else {
    }
    return
  }
  func.func @transform_0(%arg0: i32, %arg1: i32, %arg2: i32) -> (i32, i32) {
    %c0_i32 = arith.constant 0 : i32
    return %arg0, %arg2 : i32, i32
  }
  func.func @transform_1(%arg0: i32, %arg1: i32, %arg2: i32) -> (i32, i32) {
    %c0_i32 = arith.constant 0 : i32
    return %arg2, %arg1 : i32, i32
  }
  func.func @transform_2(%arg0: i32, %arg1: i32, %arg2: i32) -> (i32, i32) {
    %c0_i32 = arith.constant 0 : i32
    %c0_i32_0 = arith.constant 0 : i32
    return %c0_i32, %arg1 : i32, i32
  }
  func.func @transform_3(%arg0: i32, %arg1: i32, %arg2: i32) -> (i32, i32) {
    %c0_i32 = arith.constant 0 : i32
    return %arg0, %arg1 : i32, i32
  }
}

</mosaic_0001>

<bundles_post_ra>
// kernel: tpu_custom_call.1
= control target key start
LH: loop header
LB: loop body
LE: loop exit
PB: predicated region body
PF: predicated region fallthrough
CT: control target
= control target key end

     0   :  { %8 = vsyncpa [#allocation4], 0  ;;  %s671_s0 = inlined_call_operand.hbm [shape: bf16[128,128], index: 0, kind: input, shape index: {}]   ;;  %s672_s1 = inlined_call_operand.hbm [shape: bf16[128,128], index: 1, kind: input, shape index: {}]   ;;  %s673_s2 = inlined_call_operand.vmem [shape: f32[1,128], index: 2, kind: input, shape index: {}]   ;;  %s674_s3 = inlined_call_operand.hbm [shape: f32[128,128], index: 3, kind: output, shape index: {}]  }
   0x1   :  { %9 = vsyncpa [#allocation7], 0 }
   0x2   :  { %10 = vsyncpa [#allocation5], 0  ;;  %s605_s12 = smov [#allocation3]   ;;  %s533_s16 = scalar_lea.hbm %s671_s0, 1024 }
   0x3   :  { %s16_s13 = sshll.u32 %s605_s12, 4  ;;  %p534_p0 = scmp.ne.s32.totalorder %s671_s0, %s533_s16  ;;  %s17_s13 = int_to_ptr.vmem [resolvable:$true] %s16_s13 }
   0x4   :  { %p537_p1 = scmp.lt.u32.totalorder %s533_s16, %s671_s0 }
   0x6   :  { %p539_p2 = pnand %p537_p1, %p534_p0 }
   0x8   :  { %542 = shalt.err (!%p539_p2)
}
   0x9   :  { %s543_s21 = scalar_lea.vmem %s17_s13, 1024  ;;  %p548_p4 = scmp.lt.s32.totalorder %s17_s13, %s17_s13 }
   0xa   :  { %p544_p3 = scmp.ne.s32.totalorder %s17_s13, %s543_s21  ;;  %p549_p5 = scmp.lt.s32.totalorder %s543_s21, %s543_s21 }
   0xc   :  { %p550_p6 = por %p549_p5, %p548_p4 }
   0xe   :  { %p551_p7 = pnand %p550_p6, %p544_p3 }
  0x10   :  { %554 = shalt.err (!%p551_p7)
}
  0x11   :  { %s606_s22 = smov 64   ;;  %s607_s23 = smov 4  }
  0x12   :  { %22 = dma.hbm_to_vmem [thread:$0]  %s671_s0, 1024, %s17_s13, [#allocation4], %s606_s22, %s606_s22, %s607_s23  }
  0x13   :  { %s608_s26 = smov [#allocation6]   ;;  %s555_s30 = scalar_lea.hbm %s672_s1, 1024 }
  0x14   :  { %s28_s27 = sshll.u32 %s608_s26, 4  ;;  %p556_p8 = scmp.ne.s32.totalorder %s672_s1, %s555_s30  ;;  %s29_s27 = int_to_ptr.vmem [resolvable:$true] %s28_s27 }
  0x15   :  { %p559_p9 = scmp.lt.u32.totalorder %s555_s30, %s672_s1 }
  0x17   :  { %p561_p10 = pnand %p559_p9, %p556_p8 }
  0x19   :  { %564 = shalt.err (!%p561_p10)
}
  0x1a   :  { %s565_s8 = scalar_lea.vmem %s29_s27, 1024  ;;  %p570_p12 = scmp.lt.s32.totalorder %s29_s27, %s29_s27 }
  0x1b   :  { %p566_p11 = scmp.ne.s32.totalorder %s29_s27, %s565_s8  ;;  %p571_p13 = scmp.lt.s32.totalorder %s565_s8, %s565_s8 }
  0x1d   :  { %p572_p0 = por %p571_p13, %p570_p12 }
  0x1f   :  { %p573_p1 = pnand %p572_p0, %p566_p11 }
  0x21   :  { %576 = shalt.err (!%p573_p1)
}
  0x22   :  { %34 = dma.hbm_to_vmem [thread:$0]  %s672_s1, 1024, %s29_s27, [#allocation7], %s606_s22, %s606_s22, %s607_s23  }
  0x23   :  { %599 = dma.done.wait [#allocation4], 1024  }
  0x24   :  { %600 = vsyncadd [#allocation4], 4294966272 }
  0x25   :  { %601 = dma.done.wait [#allocation7], 1024  }
  0x26   :  { %602 = vsyncadd [#allocation7], 4294966272  ;;  %v517_v0 = vld [vmem:[#allocation6] sm:$0xff]   ;;  %v518_v1 = vld [vmem:[#allocation6 + $0x8] sm:$0xff]  }
  0x27   :  { %462 = vmatprep.subr.bf16.mxu0 %v517_v0  ;;  %494 = vmatprep.subr.bf16.mxu1 %v517_v0  ;;  %v519_v2 = vld [vmem:[#allocation6 + $0x10] sm:$0xff]   ;;  %v520_v3 = vld [vmem:[#allocation6 + $0x18] sm:$0xff]   ;;  %v525_v4 = vld [vmem:[#allocation3] sm:$0xff]  }
  0x28   :  { %463 = vmatpush3.bf16.msra.mxu0 %v517_v0  ;;  %502 = vmatpush3.bf16.msra.mxu1 %v517_v0  ;;  %v526_v5 = vld [vmem:[#allocation3 + $0x20] sm:$0xff]   ;;  %v522_v7 = vld [vmem:[#allocation6 + $0x28] sm:$0xff]   ;;  %v523_v8 = vld [vmem:[#allocation6 + $0x30] sm:$0xff]  }
  0x29   :  { %464 = vmatprep.subr.bf16.mxu0 %v518_v1  ;;  %495 = vmatprep.subr.bf16.mxu1 %v518_v1  ;;  %v521_v6 = vld [vmem:[#allocation6 + $0x20] sm:$0xff]   ;;  %v524_v9 = vld [vmem:[#allocation6 + $0x38] sm:$0xff]   ;;  %v527_v10 = vld [vmem:[#allocation3 + $0x8] sm:$0xff]  }
  0x2a   :  { %478 = vmatprep.mubr.bf16.mxu0 %v525_v4  ;;  %486 = vmatprep.mubr.bf16.mxu1 %v526_v5  ;;  %v528_v11 = vld [vmem:[#allocation3 + $0x28] sm:$0xff]   ;;  %v529_v12 = vld [vmem:[#allocation3 + $0x10] sm:$0xff]   ;;  %v531_v14 = vld [vmem:[#allocation3 + $0x18] sm:$0xff]  }
  0x2b   :  { %v530_v13 = vld [vmem:[#allocation3 + $0x30] sm:$0xff]   ;;  %v532_v15 = vld [vmem:[#allocation3 + $0x38] sm:$0xff]   ;;  %v445_v16 = vld [vmem:[%s673_s2] ss:$0 sm:$0xff]  ;;  %s609_s2 = smov [#allocation8]  }
  0x2c   :  { %465 = vmatpush3.bf16.msra.mxu0 %v518_v1  ;;  %503 = vmatpush3.bf16.msra.mxu1 %v518_v1  ;;  %s416_s11 = sshll.u32 %s609_s2, 4  ;;  %s417_s11 = int_to_ptr.vmem [resolvable:$true] %s416_s11 }
  0x2d   :  { %466 = vmatprep.subr.bf16.mxu0 %v519_v2  ;;  %496 = vmatprep.subr.bf16.mxu1 %v519_v2  ;;  %s577_s12 = scalar_lea.vmem %s417_s11, 2048  ;;  %p582_p3 = scmp.lt.s32.totalorder %s417_s11, %s417_s11 }
  0x2e   :  { %p578_p2 = scmp.ne.s32.totalorder %s417_s11, %s577_s12  ;;  %p583_p4 = scmp.lt.s32.totalorder %s577_s12, %s577_s12 }
  0x30   :  { %467 = vmatpush3.bf16.msra.mxu0 %v519_v2  ;;  %504 = vmatpush3.bf16.msra.mxu1 %v519_v2  ;;  %p584_p5 = por %p583_p4, %p582_p3 }
  0x31   :  { %468 = vmatprep.subr.bf16.mxu0 %v520_v3  ;;  %497 = vmatprep.subr.bf16.mxu1 %v520_v3 }
  0x32   :  { %p585_p6 = pnand %p584_p5, %p578_p2 }
  0x34   :  { %469 = vmatpush3.bf16.msra.mxu0 %v520_v3  ;;  %505 = vmatpush3.bf16.msra.mxu1 %v520_v3 }
  0x35   :  { %470 = vmatprep.subr.bf16.mxu0 %v521_v6  ;;  %498 = vmatprep.subr.bf16.mxu1 %v521_v6 }
  0x38   :  { %471 = vmatpush3.bf16.msra.mxu0 %v521_v6  ;;  %506 = vmatpush3.bf16.msra.mxu1 %v521_v6 }
  0x39   :  { %472 = vmatprep.subr.bf16.mxu0 %v522_v7  ;;  %499 = vmatprep.subr.bf16.mxu1 %v522_v7 }
  0x3c   :  { %473 = vmatpush3.bf16.msra.mxu0 %v522_v7  ;;  %507 = vmatpush3.bf16.msra.mxu1 %v522_v7 }
  0x3d   :  { %474 = vmatprep.subr.bf16.mxu0 %v523_v8  ;;  %500 = vmatprep.subr.bf16.mxu1 %v523_v8 }
  0x40   :  { %475 = vmatpush3.bf16.msra.mxu0 %v523_v8  ;;  %508 = vmatpush3.bf16.msra.mxu1 %v523_v8 }
  0x41   :  { %476 = vmatprep.subr.bf16.mxu0 %v524_v9  ;;  %501 = vmatprep.subr.bf16.mxu1 %v524_v9 }
  0x44   :  { %477 = vmatpush3.bf16.msra.mxu0 %v524_v9  ;;  %509 = vmatpush3.bf16.msra.mxu1 %v524_v9 }
  0x47   :  { %479 = vmatmul.mubr.bf16.vlgmr.msra.gmra.mrb[0].mxu0 %v527_v10  ;;  %487 = vmatmul.mubr.bf16.vlgmr.msra.gmra.mrb[0].mxu1 %v528_v11 }
  0x48   :  { %482 = vmatprep.mubr.bf16.mxu0 %v529_v12  ;;  %490 = vmatprep.mubr.bf16.mxu1 %v530_v13 }
  0x4f   :  { %483 = vmatmul.mubr.bf16.gmra.mrb[4].mxu0 %v531_v14  ;;  %491 = vmatmul.mubr.bf16.gmra.mrb[4].mxu1 %v532_v15 }
 0x11a   :  { %v480_v17 = vpop.f32.mrb[0].mxu0  ;;  %v488_v18 = vpop.f32.mrb[0].mxu1 }
 0x11b   :  { %v365_v19 = vadd.f32 %v480_v17, %v445_v16  ;;  %v373_v20 = vadd.f32 %v488_v18, %v445_v16  ;;  %v242_v21 = vpop.f32.mrb[1].mxu0  ;;  %v274_v22 = vpop.f32.mrb[1].mxu1 }
 0x11c   :  { %v363_v23 = vadd.f32 %v445_v16, %v242_v21  ;;  %v371_v24 = vadd.f32 %v445_v16, %v274_v22  ;;  %v481_v25 = vpop.f32.mrb[2].mxu0  ;;  %v489_v26 = vpop.f32.mrb[2].mxu1 }
 0x11d   :  { %v381_v27 = vmax.f32 %v365_v19, 0.0  ;;  %v389_v28 = vmax.f32 %v373_v20, 0.0  ;;  %v366_v29 = vadd.f32 %v481_v25, %v445_v16  ;;  %v374_v30 = vadd.f32 %v489_v26, %v445_v16  ;;  %v245_v31 = vpop.f32.mrb[3].mxu0  ;;  %v277_v32 = vpop.f32.mrb[3].mxu1 }
 0x11e   :  { %v379_v33 = vmax.f32 %v363_v23, 0.0  ;;  %v387_v34 = vmax.f32 %v371_v24, 0.0  ;;  %v364_v35 = vadd.f32 %v445_v16, %v245_v31  ;;  %v372_v36 = vadd.f32 %v445_v16, %v277_v32 }
 0x11f   :  { %397 = vst [vmem:[#allocation8 + $0x10] sm:$0xff] %v381_v27  ;;  %405 = vst [vmem:[#allocation8 + $0x50] sm:$0xff] %v389_v28  ;;  %v382_v37 = vmax.f32 %v366_v29, 0.0  ;;  %v390_v38 = vmax.f32 %v374_v30, 0.0 }
 0x120   :  { %395 = vst [vmem:[#allocation8] sm:$0xff] %v379_v33  ;;  %403 = vst [vmem:[#allocation8 + $0x40] sm:$0xff] %v387_v34  ;;  %v380_v39 = vmax.f32 %v364_v35, 0.0  ;;  %v388_v40 = vmax.f32 %v372_v36, 0.0 }
 0x121   :  { %398 = vst [vmem:[#allocation8 + $0x18] sm:$0xff] %v382_v37  ;;  %406 = vst [vmem:[#allocation8 + $0x58] sm:$0xff] %v390_v38 }
 0x122   :  { %396 = vst [vmem:[#allocation8 + $0x8] sm:$0xff] %v380_v39  ;;  %404 = vst [vmem:[#allocation8 + $0x48] sm:$0xff] %v388_v40  ;;  %v484_v41 = vpop.f32.mrb[4].mxu0  ;;  %v492_v42 = vpop.f32.mrb[4].mxu1 }
 0x123   :  { %v369_v43 = vadd.f32 %v484_v41, %v445_v16  ;;  %v377_v44 = vadd.f32 %v492_v42, %v445_v16  ;;  %v258_v45 = vpop.f32.mrb[5].mxu0  ;;  %v290_v46 = vpop.f32.mrb[5].mxu1 }
 0x124   :  { %v367_v47 = vadd.f32 %v445_v16, %v258_v45  ;;  %v375_v48 = vadd.f32 %v445_v16, %v290_v46  ;;  %v485_v49 = vpop.f32.mrb[6].mxu0  ;;  %v493_v50 = vpop.f32.mrb[6].mxu1 }
 0x125   :  { %v385_v51 = vmax.f32 %v369_v43, 0.0  ;;  %v393_v52 = vmax.f32 %v377_v44, 0.0  ;;  %v370_v53 = vadd.f32 %v485_v49, %v445_v16  ;;  %v378_v54 = vadd.f32 %v493_v50, %v445_v16  ;;  %v261_v55 = vpop.f32.mrb[7].mxu0  ;;  %v293_v56 = vpop.f32.mrb[7].mxu1 }
 0x126   :  { %v383_v57 = vmax.f32 %v367_v47, 0.0  ;;  %v391_v58 = vmax.f32 %v375_v48, 0.0  ;;  %v368_v59 = vadd.f32 %v445_v16, %v261_v55  ;;  %v376_v60 = vadd.f32 %v445_v16, %v293_v56 }
 0x127   :  { %401 = vst [vmem:[#allocation8 + $0x30] sm:$0xff] %v385_v51  ;;  %409 = vst [vmem:[#allocation8 + $0x70] sm:$0xff] %v393_v52  ;;  %v386_v61 = vmax.f32 %v370_v53, 0.0  ;;  %v394_v62 = vmax.f32 %v378_v54, 0.0 }
 0x128   :  { %399 = vst [vmem:[#allocation8 + $0x20] sm:$0xff] %v383_v57  ;;  %407 = vst [vmem:[#allocation8 + $0x60] sm:$0xff] %v391_v58  ;;  %v384_v63 = vmax.f32 %v368_v59, 0.0  ;;  %v392_v0 = vmax.f32 %v376_v60, 0.0 }
 0x129   :  { %402 = vst [vmem:[#allocation8 + $0x38] sm:$0xff] %v386_v61  ;;  %410 = vst [vmem:[#allocation8 + $0x78] sm:$0xff] %v394_v62 }
 0x12a   :  { %400 = vst [vmem:[#allocation8 + $0x28] sm:$0xff] %v384_v63  ;;  %408 = vst [vmem:[#allocation8 + $0x68] sm:$0xff] %v392_v0 }
 0x12b   :  { %588 = shalt.err (!%p585_p6)
}
 0x12c   :  { %s589_s15 = scalar_lea.hbm %s674_s3, 2048 }
 0x12d   :  { %p590_p7 = scmp.ne.s32.totalorder %s674_s3, %s589_s15  ;;  %p593_p8 = scmp.lt.u32.totalorder %s589_s15, %s674_s3 }
 0x12f   :  { %p595_p9 = pnand %p593_p8, %p590_p7 }
 0x131   :  { %598 = shalt.err (!%p595_p9)
}
 0x132   :  { %s610_s20 = smov 128   ;;  %s611_s21 = smov 8  }
 0x133   :  { %422 = dma.vmem_to_hbm [thread:$0]  %s417_s11, 2048, %s674_s3, [#allocation5], %s610_s20, %s610_s20, %s611_s21  }
 0x134   :  { %603 = dma.done.wait [#allocation5], 2048  }
 0x135   :  { %604 = vsyncadd [#allocation5], 4294965248 }
 0x136   :  { %426 = vsyncpa [#allocation4], 1 }
 0x137   :  { %427 = vsyncpa [#allocation7], 1 }
 0x138   :  { %428 = vsyncpa [#allocation5], 1 }

</bundles_post_ra>
